<compile_context>
chip_gen: v7x
topology: tpu7x:2x2x1
jax: 0.10.0
libtpu: 0.0.40
codegen_flags: <defaults>
</compile_context>

<pallas_src>
import functools

import jax
import jax.numpy as jnp
from jax.experimental import pallas as pl
from jax.experimental.pallas import tpu as pltpu

_MIB = 1024 * 1024


# ----------------------------------------------------------------------------
# Helpers
# ----------------------------------------------------------------------------
def _round_up(x, m):
    return (x + m - 1) // m * m


def _pad_to(x, shape):
    if tuple(x.shape) == tuple(shape):
        return x
    return jnp.pad(x, [(0, s - d) for d, s in zip(x.shape, shape)])


def _vmem_limit(est_bytes):
    # Generous headroom, but stay below v7x's 64 MiB physical VMEM per core.
    return int(min(max(2 * est_bytes, 32 * _MIB), 60 * _MIB))


def _pick_tk(n_p, tk_max):
    for tk in (2048, 1024, 512, 256, 128):
        if tk <= tk_max and n_p % tk == 0:
            return tk
    return 128


# ----------------------------------------------------------------------------
# Fused, gridless kernel for small graphs: both layers, everything in VMEM.
# ----------------------------------------------------------------------------
def gcn_fused_kernel(a_ref, x_ref, w1_ref, b1_ref, w2_ref, b2_ref, o_ref):
    a = a_ref[...]
    # Layer 1: relu((A @ X) @ W1 + b1); f32 accumulate, bf16 back to the MXU.
    ax = jnp.dot(a, x_ref[...], preferred_element_type=jnp.float32)
    h = jnp.dot(ax.astype(jnp.bfloat16), w1_ref[...],
                preferred_element_type=jnp.float32) + b1_ref[...]
    h = jnp.maximum(h, 0.0).astype(jnp.bfloat16)
    # Layer 2: (A @ H) @ W2 + b2.
    ah = jnp.dot(a, h, preferred_element_type=jnp.float32)
    out = jnp.dot(ah.astype(jnp.bfloat16), w2_ref[...],
                  preferred_element_type=jnp.float32) + b2_ref[...]
    o_ref[...] = out.astype(o_ref.dtype)


def gcn_fused(a, x, w1, b1, w2, b2):
    n = a.shape[0]
    f_out = w2.shape[1]
    est = (a.size * 2 + x.size * 2 + w1.size * 2 + w2.size * 2
           + (b1.size + b2.size) * 4
           + n * f_out * 4          # output
           + 6 * n * 128 * 4)       # compiler temporaries (ax, h, ah, ...)
    vspec = lambda: pl.BlockSpec(memory_space=pltpu.MemorySpace.VMEM)
    return pl.pallas_call(
        gcn_fused_kernel,
        out_shape=jax.ShapeDtypeStruct((n, f_out), jnp.float32),
        in_specs=[vspec() for _ in range(6)],
        out_specs=vspec(),
        compiler_params=pltpu.CompilerParams(vmem_limit_bytes=_vmem_limit(est)),
    )(a, x, w1, b1, w2, b2)


# ----------------------------------------------------------------------------
# Tiled layer kernel for large graphs: act((A_hat @ M) @ W + b)
#   grid = (row blocks [parallel], K blocks of A_hat columns [arbitrary])
#   M / W / b are VMEM-resident (constant index_map); only A_hat streams.
# ----------------------------------------------------------------------------
def gcn_layer_kernel(a_ref, m_ref, w_ref, b_ref, o_ref, acc_ref, *, tk,
                     apply_relu):
    k = pl.program_id(1)

    @pl.when(k == 0)
    def _():
        acc_ref[...] = jnp.zeros_like(acc_ref)

    start = pl.multiple_of(k * tk, 128)
    acc_ref[...] += jnp.dot(a_ref[...], m_ref[pl.ds(start, tk), :],
                            preferred_element_type=jnp.float32)

    @pl.when(k == pl.num_programs(1) - 1)
    def _():
        # Epilogue: tiny bf16 projection + f32 bias (+ ReLU), lane-dense store.
        out = jnp.dot(acc_ref[...].astype(jnp.bfloat16), w_ref[...],
                      preferred_element_type=jnp.float32) + b_ref[...]
        if apply_relu:
            out = jnp.maximum(out, 0.0)
        o_ref[...] = out.astype(o_ref.dtype)


def gcn_layer(a, m, w, b, *, apply_relu, out_dtype, tm, tk):
    n = a.shape[0]
    f_in = m.shape[1]
    f_out = w.shape[1]
    assert n % tm == 0 and n % tk == 0
    assert f_in % 128 == 0 and f_out % 128 == 0

    est = (2 * tm * tk * 2                  # double-buffered bf16 A tiles
           + n * f_in * 2                   # resident bf16 M
           + tm * f_in * 4                  # f32 accumulator
           + f_in * f_out * 2 + f_out * 4   # resident W + bias
           + 2 * tm * f_out * jnp.dtype(out_dtype).itemsize)

    kernel = functools.partial(gcn_layer_kernel, tk=tk, apply_relu=apply_relu)
    return pl.pallas_call(
        kernel,
        out_shape=jax.ShapeDtypeStruct((n, f_out), out_dtype),
        grid_spec=pltpu.PrefetchScalarGridSpec(
            num_scalar_prefetch=0,
            grid=(n // tm, n // tk),
            in_specs=[
                pl.BlockSpec((tm, tk), lambda i, k: (i, k)),       # A_hat tile
                pl.BlockSpec((n, f_in), lambda i, k: (0, 0)),      # M resident
                pl.BlockSpec((f_in, f_out), lambda i, k: (0, 0)),  # W resident
                pl.BlockSpec((1, f_out), lambda i, k: (0, 0)),     # bias
            ],
            out_specs=pl.BlockSpec((tm, f_out), lambda i, k: (i, 0)),
            scratch_shapes=[pltpu.VMEM((tm, f_in), jnp.float32)],
        ),
        compiler_params=pltpu.CompilerParams(
            dimension_semantics=("parallel", "arbitrary"),
            vmem_limit_bytes=_vmem_limit(est),
        ),
    )(a, m, w, b)


# ----------------------------------------------------------------------------
# Wrapper: pad to TPU-friendly shapes, run, slice back.
# ----------------------------------------------------------------------------
def gcn_forward(a_hat, x, w1, b1, w2, b2, *, tm=256, tk_max=2048,
                fused_max_nodes=2048):
    n, f_in = x.shape
    f_hid = w1.shape[1]
    f_out = w2.shape[1]

    f_in_p = _round_up(f_in, 128)
    f_hid_p = _round_up(f_hid, 128)
    f_out_p = _round_up(f_out, 128)

    # Weights bf16 (streamed to the MXU), biases f32.
    w1_p = _pad_to(w1, (f_in_p, f_hid_p)).astype(jnp.bfloat16)
    b1_p = _pad_to(b1.reshape(1, -1), (1, f_hid_p)).astype(jnp.float32)
    w2_p = _pad_to(w2, (f_hid_p, f_out_p)).astype(jnp.bfloat16)
    b2_p = _pad_to(b2.reshape(1, -1), (1, f_out_p)).astype(jnp.float32)

    if n <= fused_max_nodes:
        # Small-graph path: single gridless fused kernel, A_hat read once.
        n_p = _round_up(n, 128)
        a_p = _pad_to(a_hat.astype(jnp.bfloat16), (n_p, n_p))
        x_p = _pad_to(x.astype(jnp.bfloat16), (n_p, f_in_p))
        out = gcn_fused(a_p, x_p, w1_p, b1_p, w2_p, b2_p)
        return out[:n, :f_out]

    # Large-graph path: two tiled layer kernels; only A_hat streams from HBM.
    assert tm % 128 == 0
    n_p = _round_up(n, tm)           # pad only to the row tile, never to tk
    tk = _pick_tk(n_p, tk_max)
    a_p = _pad_to(a_hat.astype(jnp.bfloat16), (n_p, n_p))
    x_p = _pad_to(x.astype(jnp.bfloat16), (n_p, f_in_p))

    h = gcn_layer(a_p, x_p, w1_p, b1_p, apply_relu=True,
                  out_dtype=jnp.bfloat16, tm=tm, tk=tk)
    out = gcn_layer(a_p, h, w2_p, b2_p, apply_relu=False,
                    out_dtype=jnp.float32, tm=tm, tk=tk)
    return out[:n, :f_out]


# ----------------------------------------------------------------------------
# Graph / parameter construction helpers (host side)
# ----------------------------------------------------------------------------
def normalized_adjacency(edge_index, num_nodes):
    """Dense D^-1/2 (A + I) D^-1/2 matching torch_geometric's gcn_norm."""
    src, dst = edge_index[0], edge_index[1]
    a = jnp.zeros((num_nodes, num_nodes), jnp.float32)
    a = a.at[dst, src].add(1.0)                          # message src -> dst
    a = a + jnp.eye(num_nodes, dtype=jnp.float32)        # self-loops
    deg = a.sum(axis=1)
    dinv = jnp.where(deg > 0, 1.0 / jnp.sqrt(deg), 0.0)
    return dinv[:, None] * a * dinv[None, :]


def glorot(key, shape):
    lim = (6.0 / (shape[0] + shape[1])) ** 0.5
    return jax.random.uniform(key, shape, jnp.float32, -lim, lim)


if __name__ == "__main__":
    INPUT_DIM, HIDDEN_DIM, OUTPUT_DIM = 8, 32, 16

    key = jax.random.PRNGKey(0)
    kx1, kx2, kw1, kw2 = jax.random.split(key, 4)

    def make_graph(n, kx):
        x = jax.random.normal(kx, (n, INPUT_DIM), jnp.float32)
        s = jnp.arange(n, dtype=jnp.int32)
        d = (s + 1) % n
        edge_index = jnp.stack(
            [jnp.concatenate([s, d]), jnp.concatenate([d, s])], axis=0)
        return x, edge_index

    # GCNConv params: glorot weights, zero bias (PyG defaults).
    w1 = glorot(kw1, (INPUT_DIM, HIDDEN_DIM))
    b1 = jnp.zeros((1, HIDDEN_DIM), jnp.float32)
    w2 = glorot(kw2, (HIDDEN_DIM, OUTPUT_DIM))
    b2 = jnp.zeros((1, OUTPUT_DIM), jnp.float32)

    def reference(a_hat, x):
        h = jnp.maximum(a_hat @ (x @ w1) + b1, 0.0)
        return a_hat @ (h @ w2) + b2

    # --- Small graph: exercises the fused, gridless single-kernel path. ---
    N1 = 256
    x1, ei1 = make_graph(N1, kx1)
    a1 = normalized_adjacency(ei1, N1)
    out1 = gcn_forward(a1, x1, w1, b1, w2, b2)
    jax.block_until_ready(out1)
    ref1 = reference(a1, x1)
    assert out1.shape == (N1, OUTPUT_DIM)
    assert jnp.allclose(out1, ref1, atol=2e-2, rtol=2e-2), (
        float(jnp.max(jnp.abs(out1 - ref1))))

    # --- Larger graph: exercises the tiled two-kernel path (forced). ---
    N2 = 512
    x2, ei2 = make_graph(N2, kx2)
    a2 = normalized_adjacency(ei2, N2)
    out2 = gcn_forward(a2, x2, w1, b1, w2, b2, fused_max_nodes=0)
    jax.block_until_ready(out2)
    ref2 = reference(a2, x2)
    assert out2.shape == (N2, OUTPUT_DIM)
    assert jnp.allclose(out2, ref2, atol=2e-2, rtol=2e-2), (
        float(jnp.max(jnp.abs(out2 - ref2))))

    print("KERNEL_OK")
</pallas_src>

<mosaic_0001>
module attributes {stable_mosaic.version = 11 : i64} {
  func.func @gcn_fused_kernel(%arg0: memref<256x256xbf16, #tpu.memory_space<vmem>>, %arg1: memref<256x128xbf16, #tpu.memory_space<vmem>>, %arg2: memref<128x128xbf16, #tpu.memory_space<vmem>>, %arg3: memref<1x128xf32, #tpu.memory_space<vmem>>, %arg4: memref<128x128xbf16, #tpu.memory_space<vmem>>, %arg5: memref<1x128xf32, #tpu.memory_space<vmem>>, %arg6: memref<256x128xf32, #tpu.memory_space<vmem>>) attributes {dimension_semantics = [], scalar_prefetch = 0 : i64, scratch_operands = 0 : i64, tpu.core_type = #tpu.core_type<tc>} {
    %c0 = arith.constant 0 : index
    %c0_0 = arith.constant 0 : index
    %0 = vector.load %arg0[%c0, %c0_0] : memref<256x256xbf16, #tpu.memory_space<vmem>>, vector<256x256xbf16>
    %c0_1 = arith.constant 0 : index
    %c0_2 = arith.constant 0 : index
    %1 = vector.load %arg1[%c0_1, %c0_2] : memref<256x128xbf16, #tpu.memory_space<vmem>>, vector<256x128xbf16>
    %cst = arith.constant dense<0.000000e+00> : vector<256x128xf32>
    %2 = tpu.matmul %0, %1, %cst {dimension_numbers = #tpu.dot_dimension_numbers<[1], [0], [0], [1], [0, 0, 1, 1], [], []>} : vector<256x256xbf16>, vector<256x128xbf16>, vector<256x128xf32> -> vector<256x128xf32>
    %3 = arith.truncf %2 : vector<256x128xf32> to vector<256x128xbf16>
    %c0_3 = arith.constant 0 : index
    %c0_4 = arith.constant 0 : index
    %4 = vector.load %arg2[%c0_3, %c0_4] : memref<128x128xbf16, #tpu.memory_space<vmem>>, vector<128x128xbf16>
    %cst_5 = arith.constant dense<0.000000e+00> : vector<256x128xf32>
    %5 = tpu.matmul %3, %4, %cst_5 {dimension_numbers = #tpu.dot_dimension_numbers<[1], [0], [0], [1], [0, 0, 1, 1], [], []>} : vector<256x128xbf16>, vector<128x128xbf16>, vector<256x128xf32> -> vector<256x128xf32>
    %c0_6 = arith.constant 0 : index
    %c0_7 = arith.constant 0 : index
    %6 = vector.load %arg3[%c0_6, %c0_7] : memref<1x128xf32, #tpu.memory_space<vmem>>, vector<1x128xf32>
    %7 = vector.broadcast %6 : vector<1x128xf32> to vector<256x128xf32>
    %8 = arith.addf %5, %7 : vector<256x128xf32>
    %cst_8 = arith.constant 0.000000e+00 : f32
    %9 = vector.broadcast %cst_8 : f32 to vector<256x128xf32>
    %10 = arith.maximumf %8, %9 : vector<256x128xf32>
    %11 = arith.truncf %10 : vector<256x128xf32> to vector<256x128xbf16>
    %cst_9 = arith.constant dense<0.000000e+00> : vector<256x128xf32>
    %12 = tpu.matmul %0, %11, %cst_9 {dimension_numbers = #tpu.dot_dimension_numbers<[1], [0], [0], [1], [0, 0, 1, 1], [], []>} : vector<256x256xbf16>, vector<256x128xbf16>, vector<256x128xf32> -> vector<256x128xf32>
    %13 = arith.truncf %12 : vector<256x128xf32> to vector<256x128xbf16>
    %c0_10 = arith.constant 0 : index
    %c0_11 = arith.constant 0 : index
    %14 = vector.load %arg4[%c0_10, %c0_11] : memref<128x128xbf16, #tpu.memory_space<vmem>>, vector<128x128xbf16>
    %cst_12 = arith.constant dense<0.000000e+00> : vector<256x128xf32>
    %15 = tpu.matmul %13, %14, %cst_12 {dimension_numbers = #tpu.dot_dimension_numbers<[1], [0], [0], [1], [0, 0, 1, 1], [], []>} : vector<256x128xbf16>, vector<128x128xbf16>, vector<256x128xf32> -> vector<256x128xf32>
    %c0_13 = arith.constant 0 : index
    %c0_14 = arith.constant 0 : index
    %16 = vector.load %arg5[%c0_13, %c0_14] : memref<1x128xf32, #tpu.memory_space<vmem>>, vector<1x128xf32>
    %17 = vector.broadcast %16 : vector<1x128xf32> to vector<256x128xf32>
    %18 = arith.addf %15, %17 : vector<256x128xf32>
    %c0_15 = arith.constant 0 : index
    %c0_16 = arith.constant 0 : index
    %19 = vector.load %arg6[%c0_15, %c0_16] : memref<256x128xf32, #tpu.memory_space<vmem>>, vector<256x128xf32>
    tpu.vector_store %arg6[%c0_15, %c0_16], %18 {strides = array<i32>} : memref<256x128xf32, #tpu.memory_space<vmem>>, vector<256x128xf32>,
    return
  }
}

</mosaic_0001>

<bundles_post_ra>
// kernel: tpu_custom_call.1
= control target key start
LH: loop header
LB: loop body
LE: loop exit
PB: predicated region body
PF: predicated region fallthrough
CT: control target
= control target key end

     0   :  { %11 = vsyncpa [#allocation3], 0  ;;  %s2301_s0 = inlined_call_operand.hbm [shape: bf16[256,256], index: 0, kind: input, shape index: {}]   ;;  %s2302_s1 = inlined_call_operand.hbm [shape: bf16[256,128], index: 1, kind: input, shape index: {}]   ;;  %s2303_s2 = inlined_call_operand.hbm [shape: bf16[128,128], index: 2, kind: input, shape index: {}]   ;;  %s2304_s3 = inlined_call_operand.vmem [shape: f32[1,128], index: 3, kind: input, shape index: {}]   ;;  %s2305_s4 = inlined_call_operand.hbm [shape: bf16[128,128], index: 4, kind: input, shape index: {}]   ;;  %s2306_s5 = inlined_call_operand.vmem [shape: f32[1,128], index: 5, kind: input, shape index: {}]   ;;  %s2307_s6 = inlined_call_operand.hbm [shape: f32[256,128], index: 6, kind: output, shape index: {}]  }
   0x1   :  { %12 = vsyncpa [#allocation6], 0 }
   0x2   :  { %13 = vsyncpa [#allocation9], 0 }
   0x3   :  { %14 = vsyncpa [#allocation4], 0  ;;  %s1958_s21 = smov [#allocation5]   ;;  %s1840_s25 = scalar_lea.hbm %s2302_s1, 2048 }
   0x4   :  { %s32_s22 = sshll.u32 %s1958_s21, 4  ;;  %p1841_p0 = scmp.ne.s32.totalorder %s2302_s1, %s1840_s25  ;;  %s33_s22 = int_to_ptr.vmem [resolvable:$true] %s32_s22 }
   0x5   :  { %p1844_p1 = scmp.lt.u32.totalorder %s1840_s25, %s2302_s1 }
   0x7   :  { %p1846_p2 = pnand %p1844_p1, %p1841_p0 }
   0x9   :  { %1849 = shalt.err (!%p1846_p2)
}
   0xa   :  { %s1850_s30 = scalar_lea.vmem %s33_s22, 2048  ;;  %p1855_p4 = scmp.lt.s32.totalorder %s33_s22, %s33_s22 }
   0xb   :  { %p1851_p3 = scmp.ne.s32.totalorder %s33_s22, %s1850_s30  ;;  %p1856_p5 = scmp.lt.s32.totalorder %s1850_s30, %s1850_s30 }
   0xd   :  { %p1857_p6 = por %p1856_p5, %p1855_p4 }
   0xf   :  { %p1858_p7 = pnand %p1857_p6, %p1851_p3 }
  0x11   :  { %1861 = shalt.err (!%p1858_p7)
}
  0x12   :  { %s1959_s7 = smov 64   ;;  %s1960_s8 = smov 4  }
  0x13   :  { %38 = dma.hbm_to_vmem [thread:$0]  %s2302_s1, 2048, %s33_s22, [#allocation6], %s1959_s7, %s1959_s7, %s1960_s8  }
  0x14   :  { %s1961_s11 = smov [#allocation2]   ;;  %s1862_s15 = scalar_lea.hbm %s2301_s0, 4096 }
  0x15   :  { %s20_s12 = sshll.u32 %s1961_s11, 4  ;;  %p1863_p8 = scmp.ne.s32.totalorder %s2301_s0, %s1862_s15  ;;  %s21_s12 = int_to_ptr.vmem [resolvable:$true] %s20_s12 }
  0x16   :  { %p1866_p9 = scmp.lt.u32.totalorder %s1862_s15, %s2301_s0 }
  0x18   :  { %p1868_p10 = pnand %p1866_p9, %p1863_p8 }
  0x1a   :  { %1871 = shalt.err (!%p1868_p10)
}
  0x1b   :  { %s1872_s20 = scalar_lea.vmem %s21_s12, 4096  ;;  %p1877_p12 = scmp.lt.s32.totalorder %s21_s12, %s21_s12 }
  0x1c   :  { %p1873_p11 = scmp.ne.s32.totalorder %s21_s12, %s1872_s20  ;;  %p1878_p13 = scmp.lt.s32.totalorder %s1872_s20, %s1872_s20 }
  0x1e   :  { %p1879_p0 = por %p1878_p13, %p1877_p12 }
  0x20   :  { %p1880_p1 = pnand %p1879_p0, %p1873_p11 }
  0x22   :  { %1883 = shalt.err (!%p1880_p1)
}
  0x23   :  { %s1962_s1 = smov 128   ;;  %s1963_s21 = smov 8  }
  0x24   :  { %26 = dma.hbm_to_vmem [thread:$0]  %s2301_s0, 4096, %s21_s12, [#allocation3], %s1962_s1, %s1962_s1, %s1963_s21  }
  0x25   :  { %s1964_s24 = smov [#allocation7]   ;;  %s1965_s26 = smov [#allocation8]  }
  0x26   :  { %s44_s25 = sshll.u32 %s1964_s24, 4  ;;  %s58_s27 = sshll.u32 %s1965_s26, 4  ;;  %s45_s25 = int_to_ptr.vmem [resolvable:$true] %s44_s25  ;;  %s2032_s27 = int_to_ptr.vmem [resolvable:$true] %s58_s27 }
  0x27   :  { %s1884_s30 = scalar_lea.hbm %s2303_s2, 1024 }
  0x28   :  { %p1885_p2 = scmp.ne.s32.totalorder %s2303_s2, %s1884_s30  ;;  %p1888_p3 = scmp.lt.u32.totalorder %s1884_s30, %s2303_s2 }
  0x2a   :  { %p1890_p4 = pnand %p1888_p3, %p1885_p2 }
  0x2c   :  { %1893 = shalt.err (!%p1890_p4)
}
  0x2d   :  { %s1894_s0 = scalar_lea.vmem %s45_s25, 1024  ;;  %p1899_p6 = scmp.lt.s32.totalorder %s45_s25, %s45_s25 }
  0x2e   :  { %p1895_p5 = scmp.ne.s32.totalorder %s45_s25, %s1894_s0  ;;  %p1900_p7 = scmp.lt.s32.totalorder %s1894_s0, %s1894_s0 }
  0x30   :  { %p1901_p8 = por %p1900_p7, %p1899_p6 }
  0x32   :  { %p1902_p9 = pnand %p1901_p8, %p1895_p5 }
  0x34   :  { %1905 = shalt.err (!%p1902_p9)
}
  0x35   :  { %50 = dma.hbm_to_vmem [thread:$0]  %s2303_s2, 1024, %s45_s25, [#allocation6], %s1959_s7, %s1959_s7, %s1960_s8  }
  0x36   :  { %s1906_s17 = scalar_lea.hbm %s2305_s4, 1024 }
  0x37   :  { %p1907_p10 = scmp.ne.s32.totalorder %s2305_s4, %s1906_s17  ;;  %p1910_p11 = scmp.lt.u32.totalorder %s1906_s17, %s2305_s4 }
  0x39   :  { %p1912_p12 = pnand %p1910_p11, %p1907_p10 }
  0x3b   :  { %1915 = shalt.err (!%p1912_p12)
}
  0x3c   :  { %s1916_s23 = scalar_lea.vmem %s2032_s27, 1024  ;;  %p1921_p0 = scmp.lt.s32.totalorder %s2032_s27, %s2032_s27 }
  0x3d   :  { %p1917_p13 = scmp.ne.s32.totalorder %s2032_s27, %s1916_s23  ;;  %p1922_p1 = scmp.lt.s32.totalorder %s1916_s23, %s1916_s23 }
  0x3f   :  { %p1923_p2 = por %p1922_p1, %p1921_p0 }
  0x41   :  { %p1924_p3 = pnand %p1923_p2, %p1917_p13 }
  0x43   :  { %1927 = shalt.err (!%p1924_p3)
}
  0x44   :  { %64 = dma.hbm_to_vmem [thread:$0]  %s2305_s4, 1024, %s2032_s27, [#allocation9], %s1959_s7, %s1959_s7, %s1960_s8  }
  0x45   :  { %1950 = dma.done.wait [#allocation3], 4096  }
  0x46   :  { %1951 = vsyncadd [#allocation3], 4294963200 }
  0x47   :  { %1952 = dma.done.wait [#allocation6], 3072  }
  0x48   :  { %1953 = vsyncadd [#allocation6], 4294964224 }
  0x49   :  { %1954 = dma.done.wait [#allocation9], 1024  }
  0x4a   :  { %1955 = vsyncadd [#allocation9], 4294966272  ;;  %v1760_v0 = vld [vmem:[#allocation5 + $0x40] sm:$0xff]   ;;  %v1762_v2 = vld [vmem:[#allocation5 + $0x48] sm:$0xff]  }
  0x4b   :  { %v1761_v1 = vld [vmem:[#allocation5] sm:$0xff]   ;;  %1383 = vmatprep.subr.bf16.mxu0 %v1760_v0  ;;  %v1763_v3 = vld [vmem:[#allocation5 + $0x8] sm:$0xff]   ;;  %v1764_v4 = vld [vmem:[#allocation5 + $0x50] sm:$0xff]  }
  0x4c   :  { %1384 = vmatpush3.bf16.msra.mxu0 %v1761_v1  ;;  %v1765_v5 = vld [vmem:[#allocation5 + $0x10] sm:$0xff]   ;;  %v1766_v6 = vld [vmem:[#allocation5 + $0x58] sm:$0xff]   ;;  %v1768_v8 = vld [vmem:[#allocation5 + $0x60] sm:$0xff]  }
  0x4d   :  { %1385 = vmatprep.subr.bf16.mxu0 %v1762_v2  ;;  %v1767_v7 = vld [vmem:[#allocation5 + $0x18] sm:$0xff]   ;;  %v1769_v9 = vld [vmem:[#allocation5 + $0x20] sm:$0xff]   ;;  %v1770_v10 = vld [vmem:[#allocation5 + $0x68] sm:$0xff]  }
  0x4e   :  { %v2069_v11 = vld [vmem:[#allocation2 + $0x4] ss:$8 sps:$4 sm:$0xff]   ;;  %v1772_v13 = vld [vmem:[#allocation5 + $0x70] sm:$0xff]   ;;  %v1774_v15 = vld [vmem:[#allocation5 + $0x78] sm:$0xff]  }
  0x4f   :  { %v1771_v12 = vld [vmem:[#allocation5 + $0x28] sm:$0xff]   ;;  %432 = vmatprep.mubr.bf16.mxu0 %v2069_v11  ;;  %v1773_v14 = vld [vmem:[#allocation5 + $0x30] sm:$0xff]   ;;  %v1775_v16 = vld [vmem:[#allocation5 + $0x38] sm:$0xff]  }
  0x50   :  { %1386 = vmatpush3.bf16.msra.mxu0 %v1763_v3  ;;  %v2072_v17 = vld [vmem:[#allocation2] ss:$8 sps:$4 sm:$0xff]   ;;  %v2074_v18 = vld [vmem:[#allocation2 + $0x14] ss:$8 sps:$4 sm:$0xff]   ;;  %v2078_v19 = vld [vmem:[#allocation2 + $0x10] ss:$8 sps:$4 sm:$0xff]  }
  0x51   :  { %1387 = vmatprep.subr.bf16.mxu0 %v1764_v4  ;;  %v2080_v20 = vld [vmem:[#allocation2 + $0x24] ss:$8 sps:$4 sm:$0xff]   ;;  %v1826_v23 = vld [vmem:[#allocation7 + $0x10] sm:$0xff]   ;;  %v2084_v24 = vld [vmem:[#allocation2 + $0x20] ss:$8 sps:$4 sm:$0xff]  }
  0x52   :  { %v1824_v21 = vld [vmem:[#allocation7] sm:$0xff]   ;;  %v1825_v22 = vld [vmem:[#allocation7 + $0x8] sm:$0xff]   ;;  %v1827_v25 = vld [vmem:[#allocation7 + $0x18] sm:$0xff]  }
  0x53   :  { %1655 = vmatprep.subr.bf16.mxu1 %v1824_v21  ;;  %v2086_v26 = vld [vmem:[#allocation2 + $0x34] ss:$8 sps:$4 sm:$0xff]   ;;  %v2090_v27 = vld [vmem:[#allocation2 + $0x30] ss:$8 sps:$4 sm:$0xff]   ;;  %v2092_v28 = vld [vmem:[#allocation2 + $0x44] ss:$8 sps:$4 sm:$0xff]  }
  0x54   :  { %1388 = vmatpush3.bf16.msra.mxu0 %v1765_v5  ;;  %1656 = vmatpush3.bf16.msra.mxu1 %v1824_v21  ;;  %v2096_v29 = vld [vmem:[#allocation2 + $0x40] ss:$8 sps:$4 sm:$0xff]   ;;  %v2098_v30 = vld [vmem:[#allocation2 + $0x54] ss:$8 sps:$4 sm:$0xff]   ;;  %v2102_v31 = vld [vmem:[#allocation2 + $0x50] ss:$8 sps:$4 sm:$0xff]  }
  0x55   :  { %1389 = vmatprep.subr.bf16.mxu0 %v1766_v6  ;;  %1657 = vmatprep.subr.bf16.mxu1 %v1825_v22  ;;  %v2104_v32 = vld [vmem:[#allocation2 + $0x64] ss:$8 sps:$4 sm:$0xff]   ;;  %v2108_v33 = vld [vmem:[#allocation2 + $0x60] ss:$8 sps:$4 sm:$0xff]   ;;  %v2110_v34 = vld [vmem:[#allocation2 + $0x74] ss:$8 sps:$4 sm:$0xff]  }
  0x56   :  { %v2114_v35 = vld [vmem:[#allocation2 + $0x70] ss:$8 sps:$4 sm:$0xff]   ;;  %v2116_v36 = vld [vmem:[#allocation2 + $0x84] ss:$8 sps:$4 sm:$0xff]   ;;  %v2120_v37 = vld [vmem:[#allocation2 + $0x80] ss:$8 sps:$4 sm:$0xff]  }
  0x57   :  { %v2122_v38 = vld [vmem:[#allocation2 + $0x94] ss:$8 sps:$4 sm:$0xff]   ;;  %v2126_v39 = vld [vmem:[#allocation2 + $0x90] ss:$8 sps:$4 sm:$0xff]   ;;  %v2128_v40 = vld [vmem:[#allocation2 + $0xa4] ss:$8 sps:$4 sm:$0xff]  }
  0x58   :  { %1390 = vmatpush3.bf16.msra.mxu0 %v1767_v7  ;;  %1658 = vmatpush3.bf16.msra.mxu1 %v1825_v22  ;;  %v2132_v41 = vld [vmem:[#allocation2 + $0xa0] ss:$8 sps:$4 sm:$0xff]   ;;  %v2134_v42 = vld [vmem:[#allocation2 + $0xb4] ss:$8 sps:$4 sm:$0xff]   ;;  %v2138_v44 = vld [vmem:[#allocation2 + $0xb0] ss:$8 sps:$4 sm:$0xff]  }
  0x59   :  { %1391 = vmatprep.subr.bf16.mxu0 %v1768_v8  ;;  %1659 = vmatprep.subr.bf16.mxu1 %v1826_v23  ;;  %v1828_v43 = vld [vmem:[#allocation7 + $0x20] sm:$0xff]   ;;  %v1829_v46 = vld [vmem:[#allocation7 + $0x28] sm:$0xff]   ;;  %v1830_v47 = vld [vmem:[#allocation7 + $0x30] sm:$0xff]  }
  0x5a   :  { %v2140_v45 = vld [vmem:[#allocation2 + $0xc4] ss:$8 sps:$4 sm:$0xff]   ;;  %v2144_v48 = vld [vmem:[#allocation2 + $0xc0] ss:$8 sps:$4 sm:$0xff]   ;;  %v2146_v49 = vld [vmem:[#allocation2 + $0xd4] ss:$8 sps:$4 sm:$0xff]  }
  0x5b   :  { %v1831_v50 = vld [vmem:[#allocation7 + $0x38] sm:$0xff]   ;;  %v2152_v52 = vld [vmem:[#allocation2 + $0xe4] ss:$8 sps:$4 sm:$0xff]   ;;  %v2156_v53 = vld [vmem:[#allocation2 + $0xe0] ss:$8 sps:$4 sm:$0xff]  }
  0x5c   :  { %1392 = vmatpush3.bf16.msra.mxu0 %v1769_v9  ;;  %1660 = vmatpush3.bf16.msra.mxu1 %v1826_v23  ;;  %v2150_v51 = vld [vmem:[#allocation2 + $0xd0] ss:$8 sps:$4 sm:$0xff]   ;;  %v2158_v54 = vld [vmem:[#allocation2 + $0xf4] ss:$8 sps:$4 sm:$0xff]  }
  0x5d   :  { %1393 = vmatprep.subr.bf16.mxu0 %v1770_v10  ;;  %1661 = vmatprep.subr.bf16.mxu1 %v1827_v25  ;;  %v2162_v55 = vld [vmem:[#allocation2 + $0xf0] ss:$8 sps:$4 sm:$0xff]  }
  0x60   :  { %1394 = vmatpush3.bf16.msra.mxu0 %v1771_v12  ;;  %1662 = vmatpush3.bf16.msra.mxu1 %v1827_v25 }
  0x61   :  { %1395 = vmatprep.subr.bf16.mxu0 %v1772_v13  ;;  %1663 = vmatprep.subr.bf16.mxu1 %v1828_v43 }
  0x64   :  { %1396 = vmatpush3.bf16.msra.mxu0 %v1773_v14  ;;  %1664 = vmatpush3.bf16.msra.mxu1 %v1828_v43 }
  0x65   :  { %1397 = vmatprep.subr.bf16.mxu0 %v1774_v15  ;;  %1665 = vmatprep.subr.bf16.mxu1 %v1829_v46 }
  0x68   :  { %1398 = vmatpush3.bf16.msra.mxu0 %v1775_v16  ;;  %1666 = vmatpush3.bf16.msra.mxu1 %v1829_v46 }
  0x69   :  { %1667 = vmatprep.subr.bf16.mxu1 %v1830_v47 }
  0x6b   :  { %433 = vmatmul.mubr.bf16.vlgmr.msra.gmra.mrb[0].mxu0 %v2072_v17 }
  0x6c   :  { %440 = vmatprep.mubr.bf16.mxu0 %v2074_v18  ;;  %1668 = vmatpush3.bf16.msra.mxu1 %v1830_v47 }
  0x6d   :  { %1669 = vmatprep.subr.bf16.mxu1 %v1831_v50 }
  0x70   :  { %1670 = vmatpush3.bf16.msra.mxu1 %v1831_v50 }
  0x73   :  { %441 = vmatmul.mubr.bf16.gmra.mrb[4].mxu0 %v2078_v19 }
  0x74   :  { %448 = vmatprep.mubr.bf16.mxu0 %v2080_v20 }
  0x7b   :  { %449 = vmatmul.mubr.bf16.gmra.mrb[8].mxu0 %v2084_v24 }
  0x7c   :  { %456 = vmatprep.mubr.bf16.mxu0 %v2086_v26 }
  0x83   :  { %457 = vmatmul.mubr.bf16.gmra.mrb[12].mxu0 %v2090_v27 }
  0x84   :  { %464 = vmatprep.mubr.bf16.mxu0 %v2092_v28 }
  0x8b   :  { %465 = vmatmul.mubr.bf16.gmra.mrb[16].mxu0 %v2096_v29 }
  0x8c   :  { %472 = vmatprep.mubr.bf16.mxu0 %v2098_v30 }
  0x93   :  { %473 = vmatmul.mubr.bf16.gmra.mrb[20].mxu0 %v2102_v31 }
  0x94   :  { %480 = vmatprep.mubr.bf16.mxu0 %v2104_v32 }
  0x9b   :  { %481 = vmatmul.mubr.bf16.gmra.mrb[24].mxu0 %v2108_v33 }
  0x9c   :  { %488 = vmatprep.mubr.bf16.mxu0 %v2110_v34 }
  0xa3   :  { %489 = vmatmul.mubr.bf16.gmra.mrb[28].mxu0 %v2114_v35 }
  0xa4   :  { %496 = vmatprep.mubr.bf16.mxu0 %v2116_v36 }
  0xab   :  { %497 = vmatmul.mubr.bf16.gmra.mrb[32].mxu0 %v2120_v37 }
  0xac   :  { %504 = vmatprep.mubr.bf16.mxu0 %v2122_v38 }
  0xb3   :  { %505 = vmatmul.mubr.bf16.gmra.mrb[36].mxu0 %v2126_v39 }
  0xb4   :  { %512 = vmatprep.mubr.bf16.mxu0 %v2128_v40 }
  0xbb   :  { %513 = vmatmul.mubr.bf16.gmra.mrb[40].mxu0 %v2132_v41 }
  0xbc   :  { %520 = vmatprep.mubr.bf16.mxu0 %v2134_v42 }
  0xc3   :  { %521 = vmatmul.mubr.bf16.gmra.mrb[44].mxu0 %v2138_v44 }
  0xc4   :  { %528 = vmatprep.mubr.bf16.mxu0 %v2140_v45 }
  0xcb   :  { %529 = vmatmul.mubr.bf16.gmra.mrb[48].mxu0 %v2144_v48 }
  0xcc   :  { %536 = vmatprep.mubr.bf16.mxu0 %v2146_v49 }
  0xd3   :  { %537 = vmatmul.mubr.bf16.gmra.mrb[52].mxu0 %v2150_v51 }
  0xd4   :  { %544 = vmatprep.mubr.bf16.mxu0 %v2152_v52 }
  0xdb   :  { %545 = vmatmul.mubr.bf16.gmra.mrb[56].mxu0 %v2156_v53 }
  0xdc   :  { %552 = vmatprep.mubr.bf16.mxu0 %v2158_v54 }
  0xe3   :  { %553 = vmatmul.mubr.bf16.gmra.mrb[60].mxu0 %v2162_v55 }
 0x13e   :  { %v1399_v56 = vpop.f32.mrb[0].mxu0 }
 0x13f   :  { %v1400_v57 = vpop.f32.mrb[1].mxu0 }
 0x140   :  { %v1401_v58 = vadd.f32 %v1400_v57, %v1399_v56  ;;  %v1402_v59 = vpop.f32.mrb[2].mxu0 }
 0x141   :  { %v1403_v60 = vpop.f32.mrb[3].mxu0 }
 0x142   :  { %v1404_v61 = vadd.f32 %v1403_v60, %v1402_v59 }
 0x144   :  { %v561_v62 = vpack.c.bf16 %v1404_v61, %v1401_v58 }
 0x146   :  { %v1405_v63 = vpop.f32.mrb[4].mxu0  ;;  %1671 = vmatprep.mubr.bf16.mxu1 %v561_v62 }
 0x147   :  { %v1406_v0 = vpop.f32.mrb[5].mxu0 }
 0x148   :  { %v1407_v1 = vadd.f32 %v1406_v0, %v1405_v63  ;;  %v1408_v2 = vpop.f32.mrb[6].mxu0 }
 0x149   :  { %v1409_v3 = vpop.f32.mrb[7].mxu0 }
 0x14a   :  { %v1410_v4 = vadd.f32 %v1409_v3, %v1408_v2 }
 0x14c   :  { %v562_v5 = vpack.c.bf16 %v1410_v4, %v1407_v1 }
 0x14e   :  { %v1411_v6 = vpop.f32.mrb[8].mxu0  ;;  %1672 = vmatmul.mubr.bf16.vlgmr.msra.gmra.mrb[0].mxu1 %v562_v5 }
 0x14f   :  { %v1412_v7 = vpop.f32.mrb[9].mxu0 }
 0x150   :  { %v1413_v8 = vadd.f32 %v1412_v7, %v1411_v6  ;;  %v1414_v9 = vpop.f32.mrb[10].mxu0 }
 0x151   :  { %v1415_v10 = vpop.f32.mrb[11].mxu0 }
 0x152   :  { %v1416_v12 = vadd.f32 %v1415_v10, %v1414_v9 }
 0x154   :  { %v563_v13 = vpack.c.bf16 %v1416_v12, %v1413_v8 }
 0x156   :  { %v1417_v14 = vpop.f32.mrb[12].mxu0  ;;  %1675 = vmatprep.mubr.bf16.mxu1 %v563_v13 }
 0x157   :  { %v1418_v15 = vpop.f32.mrb[13].mxu0 }
 0x158   :  { %v1419_v16 = vadd.f32 %v1418_v15, %v1417_v14  ;;  %v1420_v21 = vpop.f32.mrb[14].mxu0 }
 0x159   :  { %v1421_v22 = vpop.f32.mrb[15].mxu0 }
 0x15a   :  { %v1422_v23 = vadd.f32 %v1421_v22, %v1420_v21 }
 0x15c   :  { %v564_v25 = vpack.c.bf16 %v1422_v23, %v1419_v16 }
 0x15e   :  { %v1423_v43 = vpop.f32.mrb[16].mxu0  ;;  %1676 = vmatmul.mubr.bf16.gmra.mrb[4].mxu1 %v564_v25 }
 0x15f   :  { %v1424_v46 = vpop.f32.mrb[17].mxu0 }
 0x160   :  { %v1425_v47 = vadd.f32 %v1424_v46, %v1423_v43  ;;  %v1426_v50 = vpop.f32.mrb[18].mxu0 }
 0x161   :  { %v1427_v56 = vpop.f32.mrb[19].mxu0 }
 0x162   :  { %v1428_v57 = vadd.f32 %v1427_v56, %v1426_v50 }
 0x164   :  { %v565_v58 = vpack.c.bf16 %v1428_v57, %v1425_v47 }
 0x166   :  { %v1429_v59 = vpop.f32.mrb[20].mxu0  ;;  %1679 = vmatprep.mubr.bf16.mxu1 %v565_v58 }
 0x167   :  { %v1430_v60 = vpop.f32.mrb[21].mxu0 }
 0x168   :  { %v1431_v61 = vadd.f32 %v1430_v60, %v1429_v59  ;;  %v1432_v62 = vpop.f32.mrb[22].mxu0 }
 0x169   :  { %v1433_v63 = vpop.f32.mrb[23].mxu0 }
 0x16a   :  { %v1434_v0 = vadd.f32 %v1433_v63, %v1432_v62 }
 0x16c   :  { %v566_v1 = vpack.c.bf16 %v1434_v0, %v1431_v61 }
 0x16e   :  { %v1435_v2 = vpop.f32.mrb[24].mxu0  ;;  %1680 = vmatmul.mubr.bf16.gmra.mrb[8].mxu1 %v566_v1 }
 0x16f   :  { %v1436_v3 = vpop.f32.mrb[25].mxu0 }
 0x170   :  { %v1437_v4 = vadd.f32 %v1436_v3, %v1435_v2  ;;  %v1438_v5 = vpop.f32.mrb[26].mxu0 }
 0x171   :  { %v1439_v6 = vpop.f32.mrb[27].mxu0 }
 0x172   :  { %v1440_v7 = vadd.f32 %v1439_v6, %v1438_v5 }
 0x174   :  { %v567_v8 = vpack.c.bf16 %v1440_v7, %v1437_v4 }
 0x176   :  { %v1441_v9 = vpop.f32.mrb[28].mxu0  ;;  %1683 = vmatprep.mubr.bf16.mxu1 %v567_v8 }
 0x177   :  { %v1442_v10 = vpop.f32.mrb[29].mxu0 }
 0x178   :  { %v1443_v12 = vadd.f32 %v1442_v10, %v1441_v9  ;;  %v1444_v13 = vpop.f32.mrb[30].mxu0 }
 0x179   :  { %v1445_v14 = vpop.f32.mrb[31].mxu0 }
 0x17a   :  { %v1446_v15 = vadd.f32 %v1445_v14, %v1444_v13 }
 0x17c   :  { %v568_v16 = vpack.c.bf16 %v1446_v15, %v1443_v12 }
 0x17e   :  { %v1447_v21 = vpop.f32.mrb[32].mxu0  ;;  %1684 = vmatmul.mubr.bf16.gmra.mrb[12].mxu1 %v568_v16 }
 0x17f   :  { %v1448_v22 = vpop.f32.mrb[33].mxu0 }
 0x180   :  { %v1449_v23 = vadd.f32 %v1448_v22, %v1447_v21  ;;  %v1450_v25 = vpop.f32.mrb[34].mxu0 }
 0x181   :  { %v1451_v43 = vpop.f32.mrb[35].mxu0 }
 0x182   :  { %v1452_v46 = vadd.f32 %v1451_v43, %v1450_v25 }
 0x184   :  { %v569_v47 = vpack.c.bf16 %v1452_v46, %v1449_v23 }
 0x186   :  { %v1453_v50 = vpop.f32.mrb[36].mxu0  ;;  %1687 = vmatprep.mubr.bf16.mxu1 %v569_v47 }
 0x187   :  { %v1454_v56 = vpop.f32.mrb[37].mxu0 }
 0x188   :  { %v1455_v57 = vadd.f32 %v1454_v56, %v1453_v50  ;;  %v1456_v58 = vpop.f32.mrb[38].mxu0 }
 0x189   :  { %v1457_v59 = vpop.f32.mrb[39].mxu0 }
 0x18a   :  { %v1458_v60 = vadd.f32 %v1457_v59, %v1456_v58 }
 0x18c   :  { %v570_v61 = vpack.c.bf16 %v1458_v60, %v1455_v57 }
 0x18e   :  { %v1459_v62 = vpop.f32.mrb[40].mxu0  ;;  %1688 = vmatmul.mubr.bf16.gmra.mrb[16].mxu1 %v570_v61 }
 0x18f   :  { %v1460_v63 = vpop.f32.mrb[41].mxu0 }
 0x190   :  { %v1461_v0 = vadd.f32 %v1460_v63, %v1459_v62  ;;  %v1462_v1 = vpop.f32.mrb[42].mxu0 }
 0x191   :  { %v1463_v2 = vpop.f32.mrb[43].mxu0 }
 0x192   :  { %v1464_v3 = vadd.f32 %v1463_v2, %v1462_v1 }
 0x194   :  { %v571_v4 = vpack.c.bf16 %v1464_v3, %v1461_v0 }
 0x196   :  { %v1465_v5 = vpop.f32.mrb[44].mxu0  ;;  %1691 = vmatprep.mubr.bf16.mxu1 %v571_v4 }
 0x197   :  { %v1466_v6 = vpop.f32.mrb[45].mxu0 }
 0x198   :  { %v1467_v7 = vadd.f32 %v1466_v6, %v1465_v5  ;;  %v1468_v8 = vpop.f32.mrb[46].mxu0 }
 0x199   :  { %v1469_v9 = vpop.f32.mrb[47].mxu0 }
 0x19a   :  { %v1470_v10 = vadd.f32 %v1469_v9, %v1468_v8  ;;  %v2169_v8 = vld [vmem:[%s2304_s3] ss:$0 sm:$0xff] }
 0x19c   :  { %v572_v12 = vpack.c.bf16 %v1470_v10, %v1467_v7 }
 0x19e   :  { %v1471_v13 = vpop.f32.mrb[48].mxu0  ;;  %1692 = vmatmul.mubr.bf16.gmra.mrb[20].mxu1 %v572_v12 }
 0x19f   :  { %v1472_v14 = vpop.f32.mrb[49].mxu0 }
 0x1a0   :  { %v1473_v15 = vadd.f32 %v1472_v14, %v1471_v13  ;;  %v1474_v16 = vpop.f32.mrb[50].mxu0 }
 0x1a1   :  { %v1475_v21 = vpop.f32.mrb[51].mxu0 }
 0x1a2   :  { %v1476_v22 = vadd.f32 %v1475_v21, %v1474_v16 }
 0x1a4   :  { %v573_v23 = vpack.c.bf16 %v1476_v22, %v1473_v15 }
 0x1a6   :  { %v1477_v25 = vpop.f32.mrb[52].mxu0  ;;  %1695 = vmatprep.mubr.bf16.mxu1 %v573_v23 }
 0x1a7   :  { %v1478_v43 = vpop.f32.mrb[53].mxu0 }
 0x1a8   :  { %v1479_v46 = vadd.f32 %v1478_v43, %v1477_v25  ;;  %v1480_v47 = vpop.f32.mrb[54].mxu0 }
 0x1a9   :  { %v1481_v50 = vpop.f32.mrb[55].mxu0 }
 0x1aa   :  { %v1482_v56 = vadd.f32 %v1481_v50, %v1480_v47 }
 0x1ac   :  { %v574_v57 = vpack.c.bf16 %v1482_v56, %v1479_v46 }
 0x1ae   :  { %v1483_v58 = vpop.f32.mrb[56].mxu0  ;;  %1696 = vmatmul.mubr.bf16.gmra.mrb[24].mxu1 %v574_v57 }
 0x1af   :  { %v1484_v59 = vpop.f32.mrb[57].mxu0 }
 0x1b0   :  { %v1485_v60 = vadd.f32 %v1484_v59, %v1483_v58  ;;  %v1486_v61 = vpop.f32.mrb[58].mxu0 }
 0x1b1   :  { %v1487_v62 = vpop.f32.mrb[59].mxu0 }
 0x1b2   :  { %v1488_v63 = vadd.f32 %v1487_v62, %v1486_v61 }
 0x1b4   :  { %v575_v0 = vpack.c.bf16 %v1488_v63, %v1485_v60 }
 0x1b6   :  { %v1489_v1 = vpop.f32.mrb[60].mxu0  ;;  %1699 = vmatprep.mubr.bf16.mxu1 %v575_v0 }
 0x1b7   :  { %v1490_v2 = vpop.f32.mrb[61].mxu0 }
 0x1b8   :  { %v1491_v3 = vadd.f32 %v1490_v2, %v1489_v1  ;;  %v1492_v4 = vpop.f32.mrb[62].mxu0 }
 0x1b9   :  { %v1493_v5 = vpop.f32.mrb[63].mxu0 }
 0x1ba   :  { %v1494_v6 = vadd.f32 %v1493_v5, %v1492_v4 }
 0x1bc   :  { %v576_v7 = vpack.c.bf16 %v1494_v6, %v1491_v3 }
 0x1be   :  { %1700 = vmatmul.mubr.bf16.gmra.mrb[28].mxu1 %v576_v7 }
 0x1bf   :  { %889 = vmatprep.mubr.bf16.mxu1 %v2069_v11 }
 0x221   :  { %v1673_v9 = vpop.f32.mrb[0].mxu1 }
 0x222   :  { %v691_v10 = vadd.f32 %v1673_v9, %v2169_v8  ;;  %v682_v12 = vpop.f32.mrb[1].mxu1 }
 0x223   :  { %v683_v13 = vadd.f32 %v2169_v8, %v682_v12  ;;  %v1674_v14 = vpop.f32.mrb[2].mxu1 }
 0x224   :  { %v694_v15 = vadd.f32 %v1674_v14, %v2169_v8  ;;  %v685_v16 = vpop.f32.mrb[3].mxu1  ;;  %v811_v22 = vmax.f32 %v691_v10, 0.0 }
 0x225   :  { %v686_v21 = vadd.f32 %v2169_v8, %v685_v16  ;;  %v809_v11 = vmax.f32 %v683_v13, 0.0 }
 0x226   :  { %v812_v23 = vmax.f32 %v694_v15, 0.0 }
 0x227   :  { %v810_v25 = vmax.f32 %v686_v21, 0.0 }
 0x228   :  { %v842_v43 = vpack.c.bf16 %v812_v23, %v811_v22 }
 0x229   :  { %v841_v46 = vpack.c.bf16 %v810_v25, %v809_v11 }
 0x231   :  { %v1677_v47 = vpop.f32.mrb[4].mxu1 }
 0x232   :  { %v707_v50 = vadd.f32 %v1677_v47, %v2169_v8  ;;  %v698_v56 = vpop.f32.mrb[5].mxu1 }
 0x233   :  { %v699_v57 = vadd.f32 %v2169_v8, %v698_v56  ;;  %v1678_v58 = vpop.f32.mrb[6].mxu1 }
 0x234   :  { %v710_v59 = vadd.f32 %v1678_v58, %v2169_v8  ;;  %v701_v60 = vpop.f32.mrb[7].mxu1  ;;  %v815_v62 = vmax.f32 %v707_v50, 0.0 }
 0x235   :  { %v702_v61 = vadd.f32 %v2169_v8, %v701_v60  ;;  %v813_v0 = vmax.f32 %v699_v57, 0.0 }
 0x236   :  { %v816_v63 = vmax.f32 %v710_v59, 0.0 }
 0x237   :  { %v814_v1 = vmax.f32 %v702_v61, 0.0 }
 0x238   :  { %v2179_v2 = vpack.c.bf16 %v816_v63, %v815_v62 }
 0x239   :  { %v843_v3 = vpack.c.bf16 %v814_v1, %v813_v0 }
 0x241   :  { %v1681_v4 = vpop.f32.mrb[8].mxu1 }
 0x242   :  { %v723_v5 = vadd.f32 %v1681_v4, %v2169_v8  ;;  %v714_v6 = vpop.f32.mrb[9].mxu1 }
 0x243   :  { %v715_v7 = vadd.f32 %v2169_v8, %v714_v6  ;;  %v1682_v9 = vpop.f32.mrb[10].mxu1 }
 0x244   :  { %v726_v10 = vadd.f32 %v1682_v9, %v2169_v8  ;;  %v717_v12 = vpop.f32.mrb[11].mxu1  ;;  %v819_v14 = vmax.f32 %v723_v5, 0.0 }
 0x245   :  { %v718_v13 = vadd.f32 %v2169_v8, %v717_v12  ;;  %v817_v16 = vmax.f32 %v715_v7, 0.0 }
 0x246   :  { %v820_v15 = vmax.f32 %v726_v10, 0.0 }
 0x247   :  { %v818_v21 = vmax.f32 %v718_v13, 0.0 }
 0x248   :  { %v2185_v22 = vpack.c.bf16 %v820_v15, %v819_v14 }
 0x249   :  { %v2187_v23 = vpack.c.bf16 %v818_v21, %v817_v16 }
 0x251   :  { %v1685_v11 = vpop.f32.mrb[12].mxu1 }
 0x252   :  { %v739_v25 = vadd.f32 %v1685_v11, %v2169_v8  ;;  %v730_v47 = vpop.f32.mrb[13].mxu1 }
 0x253   :  { %v731_v50 = vadd.f32 %v2169_v8, %v730_v47  ;;  %v1686_v56 = vpop.f32.mrb[14].mxu1 }
 0x254   :  { %v742_v57 = vadd.f32 %v1686_v56, %v2169_v8  ;;  %v733_v58 = vpop.f32.mrb[15].mxu1  ;;  %v823_v60 = vmax.f32 %v739_v25, 0.0 }
 0x255   :  { %v734_v59 = vadd.f32 %v2169_v8, %v733_v58  ;;  %v821_v62 = vmax.f32 %v731_v50, 0.0 }
 0x256   :  { %v824_v61 = vmax.f32 %v742_v57, 0.0 }
 0x257   :  { %v822_v63 = vmax.f32 %v734_v59, 0.0 }
 0x258   :  { %v2193_v0 = vpack.c.bf16 %v824_v61, %v823_v60 }
 0x259   :  { %v2195_v1 = vpack.c.bf16 %v822_v63, %v821_v62 }
 0x261   :  { %v1689_v4 = vpop.f32.mrb[16].mxu1 }
 0x262   :  { %v755_v5 = vadd.f32 %v1689_v4, %v2169_v8  ;;  %v746_v6 = vpop.f32.mrb[17].mxu1 }
 0x263   :  { %v747_v7 = vadd.f32 %v2169_v8, %v746_v6  ;;  %v1690_v9 = vpop.f32.mrb[18].mxu1 }
 0x264   :  { %v758_v10 = vadd.f32 %v1690_v9, %v2169_v8  ;;  %v749_v12 = vpop.f32.mrb[19].mxu1  ;;  %v827_v14 = vmax.f32 %v755_v5, 0.0 }
 0x265   :  { %v750_v13 = vadd.f32 %v2169_v8, %v749_v12  ;;  %v825_v16 = vmax.f32 %v747_v7, 0.0 }
 0x266   :  { %v828_v15 = vmax.f32 %v758_v10, 0.0 }
 0x267   :  { %v826_v21 = vmax.f32 %v750_v13, 0.0 }
 0x268   :  { %v850_v11 = vpack.c.bf16 %v828_v15, %v827_v14 }
 0x269   :  { %v849_v25 = vpack.c.bf16 %v826_v21, %v825_v16 }
 0x26b   :  { %1519 = vmatprep.subr.bf16.mxu1 %v849_v25 }
 0x26c   :  { %1520 = vmatpush3.bf16.msra.mxu1 %v841_v46 }
 0x26d   :  { %1521 = vmatprep.subr.bf16.mxu1 %v850_v11 }
 0x270   :  { %1522 = vmatpush3.bf16.msra.mxu1 %v842_v43 }
 0x271   :  { %v1693_v47 = vpop.f32.mrb[20].mxu1 }
 0x272   :  { %v771_v50 = vadd.f32 %v1693_v47, %v2169_v8  ;;  %v762_v56 = vpop.f32.mrb[21].mxu1 }
 0x273   :  { %v763_v57 = vadd.f32 %v2169_v8, %v762_v56  ;;  %v1694_v58 = vpop.f32.mrb[22].mxu1 }
 0x274   :  { %v774_v59 = vadd.f32 %v1694_v58, %v2169_v8  ;;  %v765_v60 = vpop.f32.mrb[23].mxu1  ;;  %v831_v62 = vmax.f32 %v771_v50, 0.0 }
 0x275   :  { %v766_v61 = vadd.f32 %v2169_v8, %v765_v60  ;;  %v829_v4 = vmax.f32 %v763_v57, 0.0 }
 0x276   :  { %v832_v63 = vmax.f32 %v774_v59, 0.0 }
 0x277   :  { %v830_v5 = vmax.f32 %v766_v61, 0.0 }
 0x278   :  { %v852_v6 = vpack.c.bf16 %v832_v63, %v831_v62 }
 0x279   :  { %v851_v46 = vpack.c.bf16 %v830_v5, %v829_v4 }
 0x27b   :  { %1523 = vmatprep.subr.bf16.mxu1 %v851_v46  ;;  %v1833_v46 = vld [vmem:[#allocation8 + $0x8] sm:$0xff]  }
 0x27c   :  { %1524 = vmatpush3.bf16.msra.mxu1 %v843_v3 }
 0x27d   :  { %1525 = vmatprep.subr.bf16.mxu1 %v852_v6 }
 0x280   :  { %1526 = vmatpush3.bf16.msra.mxu1 %v2179_v2 }
 0x281   :  { %v1697_v43 = vpop.f32.mrb[24].mxu1 }
 0x282   :  { %v787_v7 = vadd.f32 %v1697_v43, %v2169_v8  ;;  %v778_v9 = vpop.f32.mrb[25].mxu1  ;;  %v1834_v43 = vld [vmem:[#allocation8 + $0x10] sm:$0xff]  }
 0x283   :  { %v779_v10 = vadd.f32 %v2169_v8, %v778_v9  ;;  %v1698_v12 = vpop.f32.mrb[26].mxu1 }
 0x284   :  { %v790_v13 = vadd.f32 %v1698_v12, %v2169_v8  ;;  %v781_v14 = vpop.f32.mrb[27].mxu1  ;;  %v835_v16 = vmax.f32 %v787_v7, 0.0  ;;  %v1836_v7 = vld [vmem:[#allocation8 + $0x20] sm:$0xff]  }
 0x285   :  { %v782_v15 = vadd.f32 %v2169_v8, %v781_v14  ;;  %v833_v11 = vmax.f32 %v779_v10, 0.0 }
 0x286   :  { %v836_v21 = vmax.f32 %v790_v13, 0.0 }
 0x287   :  { %v834_v25 = vmax.f32 %v782_v15, 0.0 }
 0x288   :  { %v854_v3 = vpack.c.bf16 %v836_v21, %v835_v16 }
 0x289   :  { %v853_v47 = vpack.c.bf16 %v834_v25, %v833_v11 }
 0x28b   :  { %1527 = vmatprep.subr.bf16.mxu1 %v853_v47 }
 0x28c   :  { %1528 = vmatpush3.bf16.msra.mxu1 %v2187_v23 }
 0x28d   :  { %1529 = vmatprep.subr.bf16.mxu1 %v854_v3 }
 0x290   :  { %1530 = vmatpush3.bf16.msra.mxu1 %v2185_v22  ;;  %v1832_v22 = vld [vmem:[#allocation8] sm:$0xff]  }
 0x291   :  { %v1701_v2 = vpop.f32.mrb[28].mxu1  ;;  %1703 = vmatprep.subr.bf16.mxu0 %v1832_v22 }
 0x292   :  { %v803_v50 = vadd.f32 %v1701_v2, %v2169_v8  ;;  %v794_v56 = vpop.f32.mrb[29].mxu1  ;;  %1704 = vmatpush3.bf16.msra.mxu0 %v1832_v22 }
 0x293   :  { %v795_v57 = vadd.f32 %v2169_v8, %v794_v56  ;;  %v1702_v58 = vpop.f32.mrb[30].mxu1  ;;  %1705 = vmatprep.subr.bf16.mxu0 %v1833_v46 }
 0x294   :  { %v806_v59 = vadd.f32 %v1702_v58, %v2169_v8  ;;  %v797_v60 = vpop.f32.mrb[31].mxu1  ;;  %v839_v62 = vmax.f32 %v803_v50, 0.0 }
 0x295   :  { %v798_v61 = vadd.f32 %v2169_v8, %v797_v60  ;;  %v837_v4 = vmax.f32 %v795_v57, 0.0  ;;  %v1835_v8 = vld [vmem:[#allocation8 + $0x18] sm:$0xff]  }
 0x296   :  { %v840_v63 = vmax.f32 %v806_v59, 0.0  ;;  %1706 = vmatpush3.bf16.msra.mxu0 %v1833_v46 }
 0x297   :  { %v838_v5 = vmax.f32 %v798_v61, 0.0  ;;  %1707 = vmatprep.subr.bf16.mxu0 %v1834_v43 }
 0x298   :  { %v856_v23 = vpack.c.bf16 %v840_v63, %v839_v62 }
 0x299   :  { %v855_v6 = vpack.c.bf16 %v838_v5, %v837_v4 }
 0x29a   :  { %1708 = vmatpush3.bf16.msra.mxu0 %v1834_v43 }
 0x29b   :  { %1531 = vmatprep.subr.bf16.mxu1 %v855_v6  ;;  %1709 = vmatprep.subr.bf16.mxu0 %v1835_v8 }
 0x29c   :  { %1532 = vmatpush3.bf16.msra.mxu1 %v2195_v1 }
 0x29d   :  { %1533 = vmatprep.subr.bf16.mxu1 %v856_v23 }
 0x29e   :  { %1710 = vmatpush3.bf16.msra.mxu0 %v1835_v8 }
 0x29f   :  { %1711 = vmatprep.subr.bf16.mxu0 %v1836_v7 }
 0x2a0   :  { %1534 = vmatpush3.bf16.msra.mxu1 %v2193_v0 }
 0x2a2   :  { %1712 = vmatpush3.bf16.msra.mxu0 %v1836_v7 }
 0x2a3   :  { %890 = vmatmul.mubr.bf16.vlgmr.msra.gmra.mrb[32].mxu1 %v2072_v17  ;;  %v1837_v17 = vld [vmem:[#allocation8 + $0x28] sm:$0xff]  }
 0x2a4   :  { %897 = vmatprep.mubr.bf16.mxu1 %v2074_v18  ;;  %1713 = vmatprep.subr.bf16.mxu0 %v1837_v17  ;;  %v1838_v18 = vld [vmem:[#allocation8 + $0x30] sm:$0xff]  }
 0x2a6   :  { %1714 = vmatpush3.bf16.msra.mxu0 %v1837_v17 }
 0x2a7   :  { %1715 = vmatprep.subr.bf16.mxu0 %v1838_v18 }
 0x2aa   :  { %1716 = vmatpush3.bf16.msra.mxu0 %v1838_v18 }
 0x2ab   :  { %898 = vmatmul.mubr.bf16.gmra.mrb[36].mxu1 %v2078_v19  ;;  %v1839_v19 = vld [vmem:[#allocation8 + $0x38] sm:$0xff]  }
 0x2ac   :  { %905 = vmatprep.mubr.bf16.mxu1 %v2080_v20  ;;  %1717 = vmatprep.subr.bf16.mxu0 %v1839_v19 }
 0x2ae   :  { %1718 = vmatpush3.bf16.msra.mxu0 %v1839_v19 }
 0x2b3   :  { %906 = vmatmul.mubr.bf16.gmra.mrb[40].mxu1 %v2084_v24 }
 0x2b4   :  { %913 = vmatprep.mubr.bf16.mxu1 %v2086_v26 }
 0x2bb   :  { %914 = vmatmul.mubr.bf16.gmra.mrb[44].mxu1 %v2090_v27 }
 0x2bc   :  { %921 = vmatprep.mubr.bf16.mxu1 %v2092_v28 }
 0x2c3   :  { %922 = vmatmul.mubr.bf16.gmra.mrb[48].mxu1 %v2096_v29 }
 0x2c4   :  { %929 = vmatprep.mubr.bf16.mxu1 %v2098_v30 }
 0x2cb   :  { %930 = vmatmul.mubr.bf16.gmra.mrb[52].mxu1 %v2102_v31 }
 0x2cc   :  { %937 = vmatprep.mubr.bf16.mxu1 %v2104_v32 }
 0x2d3   :  { %938 = vmatmul.mubr.bf16.gmra.mrb[56].mxu1 %v2108_v33 }
 0x2d4   :  { %945 = vmatprep.mubr.bf16.mxu1 %v2110_v34 }
 0x2db   :  { %946 = vmatmul.mubr.bf16.gmra.mrb[60].mxu1 %v2114_v35 }
 0x2dc   :  { %953 = vmatprep.mubr.bf16.mxu1 %v2116_v36 }
 0x2e3   :  { %954 = vmatmul.mubr.bf16.gmra.mrb[64].mxu1 %v2120_v37 }
 0x2e4   :  { %961 = vmatprep.mubr.bf16.mxu1 %v2122_v38 }
 0x2eb   :  { %962 = vmatmul.mubr.bf16.gmra.mrb[68].mxu1 %v2126_v39 }
 0x2ec   :  { %969 = vmatprep.mubr.bf16.mxu1 %v2128_v40 }
 0x2f3   :  { %970 = vmatmul.mubr.bf16.gmra.mrb[72].mxu1 %v2132_v41 }
 0x2f4   :  { %977 = vmatprep.mubr.bf16.mxu1 %v2134_v42 }
 0x2fb   :  { %978 = vmatmul.mubr.bf16.gmra.mrb[76].mxu1 %v2138_v44 }
 0x2fc   :  { %985 = vmatprep.mubr.bf16.mxu1 %v2140_v45 }
 0x303   :  { %986 = vmatmul.mubr.bf16.gmra.mrb[80].mxu1 %v2144_v48 }
 0x304   :  { %993 = vmatprep.mubr.bf16.mxu1 %v2146_v49 }
 0x30b   :  { %994 = vmatmul.mubr.bf16.gmra.mrb[84].mxu1 %v2150_v51 }
 0x30c   :  { %1001 = vmatprep.mubr.bf16.mxu1 %v2152_v52 }
 0x313   :  { %1002 = vmatmul.mubr.bf16.gmra.mrb[88].mxu1 %v2156_v53 }
 0x314   :  { %1009 = vmatprep.mubr.bf16.mxu1 %v2158_v54 }
 0x31b   :  { %1010 = vmatmul.mubr.bf16.gmra.mrb[92].mxu1 %v2162_v55 }
 0x376   :  { %v1535_v20 = vpop.f32.mrb[32].mxu1 }
 0x377   :  { %v1536_v24 = vpop.f32.mrb[33].mxu1 }
 0x378   :  { %v1537_v26 = vadd.f32 %v1536_v24, %v1535_v20  ;;  %v1538_v27 = vpop.f32.mrb[34].mxu1 }
 0x379   :  { %v1539_v28 = vpop.f32.mrb[35].mxu1 }
 0x37a   :  { %v1540_v29 = vadd.f32 %v1539_v28, %v1538_v27 }
 0x37c   :  { %v1018_v30 = vpack.c.bf16 %v1540_v29, %v1537_v26 }
 0x37e   :  { %v1541_v31 = vpop.f32.mrb[36].mxu1  ;;  %1719 = vmatprep.mubr.bf16.mxu0 %v1018_v30 }
 0x37f   :  { %v1542_v32 = vpop.f32.mrb[37].mxu1 }
 0x380   :  { %v1543_v33 = vadd.f32 %v1542_v32, %v1541_v31  ;;  %v1544_v34 = vpop.f32.mrb[38].mxu1 }
 0x381   :  { %v1545_v35 = vpop.f32.mrb[39].mxu1 }
 0x382   :  { %v1546_v36 = vadd.f32 %v1545_v35, %v1544_v34 }
 0x384   :  { %v1019_v37 = vpack.c.bf16 %v1546_v36, %v1543_v33 }
 0x386   :  { %1720 = vmatmul.mubr.bf16.vlgmr.msra.gmra.mrb[64].mxu0 %v1019_v37  ;;  %v1547_v38 = vpop.f32.mrb[40].mxu1 }
 0x387   :  { %v1548_v39 = vpop.f32.mrb[41].mxu1 }
 0x388   :  { %v1549_v40 = vadd.f32 %v1548_v39, %v1547_v38  ;;  %v1550_v41 = vpop.f32.mrb[42].mxu1 }
 0x389   :  { %v1551_v42 = vpop.f32.mrb[43].mxu1 }
 0x38a   :  { %v1552_v44 = vadd.f32 %v1551_v42, %v1550_v41 }
 0x38c   :  { %v1020_v45 = vpack.c.bf16 %v1552_v44, %v1549_v40 }
 0x38e   :  { %v1553_v48 = vpop.f32.mrb[44].mxu1  ;;  %1723 = vmatprep.mubr.bf16.mxu0 %v1020_v45 }
 0x38f   :  { %v1554_v49 = vpop.f32.mrb[45].mxu1 }
 0x390   :  { %v1555_v51 = vadd.f32 %v1554_v49, %v1553_v48  ;;  %v1556_v52 = vpop.f32.mrb[46].mxu1 }
 0x391   :  { %v1557_v53 = vpop.f32.mrb[47].mxu1 }
 0x392   :  { %v1558_v54 = vadd.f32 %v1557_v53, %v1556_v52 }
 0x394   :  { %v1021_v55 = vpack.c.bf16 %v1558_v54, %v1555_v51 }
 0x396   :  { %1724 = vmatmul.mubr.bf16.gmra.mrb[68].mxu0 %v1021_v55  ;;  %v1559_v0 = vpop.f32.mrb[48].mxu1 }
 0x397   :  { %v1560_v1 = vpop.f32.mrb[49].mxu1 }
 0x398   :  { %v1561_v9 = vadd.f32 %v1560_v1, %v1559_v0  ;;  %v1562_v10 = vpop.f32.mrb[50].mxu1 }
 0x399   :  { %v1563_v12 = vpop.f32.mrb[51].mxu1 }
 0x39a   :  { %v1564_v13 = vadd.f32 %v1563_v12, %v1562_v10 }
 0x39c   :  { %v1022_v14 = vpack.c.bf16 %v1564_v13, %v1561_v9 }
 0x39e   :  { %v1565_v15 = vpop.f32.mrb[52].mxu1  ;;  %1727 = vmatprep.mubr.bf16.mxu0 %v1022_v14 }
 0x39f   :  { %v1566_v16 = vpop.f32.mrb[53].mxu1 }
 0x3a0   :  { %v1567_v21 = vadd.f32 %v1566_v16, %v1565_v15  ;;  %v1568_v11 = vpop.f32.mrb[54].mxu1 }
 0x3a1   :  { %v1569_v25 = vpop.f32.mrb[55].mxu1 }
 0x3a2   :  { %v1570_v3 = vadd.f32 %v1569_v25, %v1568_v11 }
 0x3a4   :  { %v1023_v47 = vpack.c.bf16 %v1570_v3, %v1567_v21 }
 0x3a6   :  { %1728 = vmatmul.mubr.bf16.gmra.mrb[72].mxu0 %v1023_v47  ;;  %v1571_v2 = vpop.f32.mrb[56].mxu1 }
 0x3a7   :  { %v1572_v50 = vpop.f32.mrb[57].mxu1 }
 0x3a8   :  { %v1573_v56 = vadd.f32 %v1572_v50, %v1571_v2  ;;  %v1574_v57 = vpop.f32.mrb[58].mxu1 }
 0x3a9   :  { %v1575_v58 = vpop.f32.mrb[59].mxu1 }
 0x3aa   :  { %v1576_v59 = vadd.f32 %v1575_v58, %v1574_v57 }
 0x3ac   :  { %v1024_v60 = vpack.c.bf16 %v1576_v59, %v1573_v56 }
 0x3ae   :  { %v1577_v61 = vpop.f32.mrb[60].mxu1  ;;  %1731 = vmatprep.mubr.bf16.mxu0 %v1024_v60  ;;  %v2252_v60 = vld [vmem:[%s2306_s5] ss:$0 sm:$0xff]  ;;  %s1966_s5 = smov [#allocation10]  }
 0x3af   :  { %v1578_v62 = vpop.f32.mrb[61].mxu1  ;;  %s1303_s25 = sshll.u32 %s1966_s5, 4  ;;  %s1304_s25 = int_to_ptr.vmem [resolvable:$true] %s1303_s25 }
 0x3b0   :  { %v1579_v63 = vadd.f32 %v1578_v62, %v1577_v61  ;;  %v1580_v4 = vpop.f32.mrb[62].mxu1  ;;  %s1928_s26 = scalar_lea.vmem %s1304_s25, 4096  ;;  %p1933_p5 = scmp.lt.s32.totalorder %s1304_s25, %s1304_s25 }
 0x3b1   :  { %v1581_v5 = vpop.f32.mrb[63].mxu1  ;;  %p1929_p4 = scmp.ne.s32.totalorder %s1304_s25, %s1928_s26  ;;  %p1934_p6 = scmp.lt.s32.totalorder %s1928_s26, %s1928_s26 }
 0x3b2   :  { %v1582_v23 = vadd.f32 %v1581_v5, %v1580_v4 }
 0x3b3   :  { %p1935_p7 = por %p1934_p6, %p1933_p5 }
 0x3b4   :  { %v1025_v6 = vpack.c.bf16 %v1582_v23, %v1579_v63 }
 0x3b5   :  { %p1936_p8 = pnand %p1935_p7, %p1929_p4 }
 0x3b6   :  { %1732 = vmatmul.mubr.bf16.gmra.mrb[76].mxu0 %v1025_v6  ;;  %v1583_v22 = vpop.f32.mrb[64].mxu1 }
 0x3b7   :  { %v1584_v46 = vpop.f32.mrb[65].mxu1 }
 0x3b8   :  { %v1585_v43 = vadd.f32 %v1584_v46, %v1583_v22  ;;  %v1586_v8 = vpop.f32.mrb[66].mxu1 }
 0x3b9   :  { %v1587_v7 = vpop.f32.mrb[67].mxu1 }
 0x3ba   :  { %v1588_v17 = vadd.f32 %v1587_v7, %v1586_v8 }
 0x3bc   :  { %v1026_v18 = vpack.c.bf16 %v1588_v17, %v1585_v43 }
 0x3be   :  { %v1589_v19 = vpop.f32.mrb[68].mxu1  ;;  %1735 = vmatprep.mubr.bf16.mxu0 %v1026_v18 }
 0x3bf   :  { %v1590_v20 = vpop.f32.mrb[69].mxu1 }
 0x3c0   :  { %v1591_v24 = vadd.f32 %v1590_v20, %v1589_v19  ;;  %v1592_v26 = vpop.f32.mrb[70].mxu1 }
 0x3c1   :  { %v1593_v27 = vpop.f32.mrb[71].mxu1 }
 0x3c2   :  { %v1594_v28 = vadd.f32 %v1593_v27, %v1592_v26 }
 0x3c4   :  { %v1027_v29 = vpack.c.bf16 %v1594_v28, %v1591_v24 }
 0x3c6   :  { %1736 = vmatmul.mubr.bf16.gmra.mrb[80].mxu0 %v1027_v29  ;;  %v1595_v30 = vpop.f32.mrb[72].mxu1 }
 0x3c7   :  { %v1596_v31 = vpop.f32.mrb[73].mxu1 }
 0x3c8   :  { %v1597_v32 = vadd.f32 %v1596_v31, %v1595_v30  ;;  %v1598_v33 = vpop.f32.mrb[74].mxu1 }
 0x3c9   :  { %v1599_v34 = vpop.f32.mrb[75].mxu1 }
 0x3ca   :  { %v1600_v35 = vadd.f32 %v1599_v34, %v1598_v33 }
 0x3cc   :  { %v1028_v36 = vpack.c.bf16 %v1600_v35, %v1597_v32 }
 0x3ce   :  { %v1601_v37 = vpop.f32.mrb[76].mxu1  ;;  %1739 = vmatprep.mubr.bf16.mxu0 %v1028_v36 }
 0x3cf   :  { %v1602_v38 = vpop.f32.mrb[77].mxu1 }
 0x3d0   :  { %v1603_v39 = vadd.f32 %v1602_v38, %v1601_v37  ;;  %v1604_v40 = vpop.f32.mrb[78].mxu1 }
 0x3d1   :  { %v1605_v41 = vpop.f32.mrb[79].mxu1 }
 0x3d2   :  { %v1606_v42 = vadd.f32 %v1605_v41, %v1604_v40 }
 0x3d4   :  { %v1029_v44 = vpack.c.bf16 %v1606_v42, %v1603_v39 }
 0x3d6   :  { %1740 = vmatmul.mubr.bf16.gmra.mrb[84].mxu0 %v1029_v44  ;;  %v1607_v45 = vpop.f32.mrb[80].mxu1 }
 0x3d7   :  { %v1608_v48 = vpop.f32.mrb[81].mxu1 }
 0x3d8   :  { %v1609_v49 = vadd.f32 %v1608_v48, %v1607_v45  ;;  %v1610_v51 = vpop.f32.mrb[82].mxu1 }
 0x3d9   :  { %v1611_v52 = vpop.f32.mrb[83].mxu1 }
 0x3da   :  { %v1612_v53 = vadd.f32 %v1611_v52, %v1610_v51 }
 0x3dc   :  { %v1030_v54 = vpack.c.bf16 %v1612_v53, %v1609_v49 }
 0x3de   :  { %v1613_v55 = vpop.f32.mrb[84].mxu1  ;;  %1743 = vmatprep.mubr.bf16.mxu0 %v1030_v54 }
 0x3df   :  { %v1614_v0 = vpop.f32.mrb[85].mxu1 }
 0x3e0   :  { %v1615_v1 = vadd.f32 %v1614_v0, %v1613_v55  ;;  %v1616_v9 = vpop.f32.mrb[86].mxu1 }
 0x3e1   :  { %v1617_v10 = vpop.f32.mrb[87].mxu1 }
 0x3e2   :  { %v1618_v12 = vadd.f32 %v1617_v10, %v1616_v9 }
 0x3e4   :  { %v1031_v13 = vpack.c.bf16 %v1618_v12, %v1615_v1 }
 0x3e6   :  { %1744 = vmatmul.mubr.bf16.gmra.mrb[88].mxu0 %v1031_v13  ;;  %v1619_v14 = vpop.f32.mrb[88].mxu1 }
 0x3e7   :  { %v1620_v15 = vpop.f32.mrb[89].mxu1 }
 0x3e8   :  { %v1621_v16 = vadd.f32 %v1620_v15, %v1619_v14  ;;  %v1622_v21 = vpop.f32.mrb[90].mxu1 }
 0x3e9   :  { %v1623_v11 = vpop.f32.mrb[91].mxu1 }
 0x3ea   :  { %v1624_v25 = vadd.f32 %v1623_v11, %v1622_v21 }
 0x3ec   :  { %v1032_v3 = vpack.c.bf16 %v1624_v25, %v1621_v16 }
 0x3ee   :  { %v1625_v47 = vpop.f32.mrb[92].mxu1  ;;  %1747 = vmatprep.mubr.bf16.mxu0 %v1032_v3 }
 0x3ef   :  { %v1626_v2 = vpop.f32.mrb[93].mxu1 }
 0x3f0   :  { %v1627_v50 = vadd.f32 %v1626_v2, %v1625_v47  ;;  %v1628_v56 = vpop.f32.mrb[94].mxu1 }
 0x3f1   :  { %v1629_v57 = vpop.f32.mrb[95].mxu1 }
 0x3f2   :  { %v1630_v58 = vadd.f32 %v1629_v57, %v1628_v56 }
 0x3f4   :  { %v1033_v59 = vpack.c.bf16 %v1630_v58, %v1627_v50 }
 0x3f6   :  { %1748 = vmatmul.mubr.bf16.gmra.mrb[92].mxu0 %v1033_v59 }
 0x459   :  { %v1721_v61 = vpop.f32.mrb[64].mxu0 }
 0x45a   :  { %v1148_v62 = vadd.f32 %v1721_v61, %v2252_v60  ;;  %v1139_v63 = vpop.f32.mrb[65].mxu0 }
 0x45b   :  { %v1140_v4 = vadd.f32 %v2252_v60, %v1139_v63  ;;  %v1722_v5 = vpop.f32.mrb[66].mxu0 }
 0x45c   :  { %1268 = vst [vmem:[#allocation10 + $0x10] sm:$0xff] %v1148_v62  ;;  %v1151_v23 = vadd.f32 %v1722_v5, %v2252_v60  ;;  %v1142_v6 = vpop.f32.mrb[67].mxu0 }
 0x45d   :  { %1266 = vst [vmem:[#allocation10] sm:$0xff] %v1140_v4  ;;  %v1143_v22 = vadd.f32 %v2252_v60, %v1142_v6 }
 0x45e   :  { %1269 = vst [vmem:[#allocation10 + $0x18] sm:$0xff] %v1151_v23 }
 0x45f   :  { %1267 = vst [vmem:[#allocation10 + $0x8] sm:$0xff] %v1143_v22 }
 0x469   :  { %v1725_v46 = vpop.f32.mrb[68].mxu0 }
 0x46a   :  { %v1164_v43 = vadd.f32 %v1725_v46, %v2252_v60  ;;  %v1155_v8 = vpop.f32.mrb[69].mxu0 }
 0x46b   :  { %v1156_v7 = vadd.f32 %v2252_v60, %v1155_v8  ;;  %v1726_v17 = vpop.f32.mrb[70].mxu0 }
 0x46c   :  { %1272 = vst [vmem:[#allocation10 + $0x30] sm:$0xff] %v1164_v43  ;;  %v1167_v18 = vadd.f32 %v1726_v17, %v2252_v60  ;;  %v1158_v19 = vpop.f32.mrb[71].mxu0 }
 0x46d   :  { %1270 = vst [vmem:[#allocation10 + $0x20] sm:$0xff] %v1156_v7  ;;  %v1159_v20 = vadd.f32 %v2252_v60, %v1158_v19 }
 0x46e   :  { %1273 = vst [vmem:[#allocation10 + $0x38] sm:$0xff] %v1167_v18 }
 0x46f   :  { %1271 = vst [vmem:[#allocation10 + $0x28] sm:$0xff] %v1159_v20 }
 0x479   :  { %v1729_v24 = vpop.f32.mrb[72].mxu0 }
 0x47a   :  { %v1180_v26 = vadd.f32 %v1729_v24, %v2252_v60  ;;  %v1171_v27 = vpop.f32.mrb[73].mxu0 }
 0x47b   :  { %v1172_v28 = vadd.f32 %v2252_v60, %v1171_v27  ;;  %v1730_v29 = vpop.f32.mrb[74].mxu0 }
 0x47c   :  { %1276 = vst [vmem:[#allocation10 + $0x50] sm:$0xff] %v1180_v26  ;;  %v1183_v30 = vadd.f32 %v1730_v29, %v2252_v60  ;;  %v1174_v31 = vpop.f32.mrb[75].mxu0 }
 0x47d   :  { %1274 = vst [vmem:[#allocation10 + $0x40] sm:$0xff] %v1172_v28  ;;  %v1175_v32 = vadd.f32 %v2252_v60, %v1174_v31 }
 0x47e   :  { %1277 = vst [vmem:[#allocation10 + $0x58] sm:$0xff] %v1183_v30 }
 0x47f   :  { %1275 = vst [vmem:[#allocation10 + $0x48] sm:$0xff] %v1175_v32 }
 0x489   :  { %v1733_v33 = vpop.f32.mrb[76].mxu0 }
 0x48a   :  { %v1196_v34 = vadd.f32 %v1733_v33, %v2252_v60  ;;  %v1187_v35 = vpop.f32.mrb[77].mxu0 }
 0x48b   :  { %v1188_v36 = vadd.f32 %v2252_v60, %v1187_v35  ;;  %v1734_v37 = vpop.f32.mrb[78].mxu0 }
 0x48c   :  { %1280 = vst [vmem:[#allocation10 + $0x70] sm:$0xff] %v1196_v34  ;;  %v1199_v38 = vadd.f32 %v1734_v37, %v2252_v60  ;;  %v1190_v39 = vpop.f32.mrb[79].mxu0 }
 0x48d   :  { %1278 = vst [vmem:[#allocation10 + $0x60] sm:$0xff] %v1188_v36  ;;  %v1191_v40 = vadd.f32 %v2252_v60, %v1190_v39 }
 0x48e   :  { %1281 = vst [vmem:[#allocation10 + $0x78] sm:$0xff] %v1199_v38 }
 0x48f   :  { %1279 = vst [vmem:[#allocation10 + $0x68] sm:$0xff] %v1191_v40 }
 0x499   :  { %v1737_v41 = vpop.f32.mrb[80].mxu0 }
 0x49a   :  { %v1212_v42 = vadd.f32 %v1737_v41, %v2252_v60  ;;  %v1203_v44 = vpop.f32.mrb[81].mxu0 }
 0x49b   :  { %v1204_v45 = vadd.f32 %v2252_v60, %v1203_v44  ;;  %v1738_v48 = vpop.f32.mrb[82].mxu0 }
 0x49c   :  { %1284 = vst [vmem:[#allocation10 + $0x90] sm:$0xff] %v1212_v42  ;;  %v1215_v49 = vadd.f32 %v1738_v48, %v2252_v60  ;;  %v1206_v51 = vpop.f32.mrb[83].mxu0 }
 0x49d   :  { %1282 = vst [vmem:[#allocation10 + $0x80] sm:$0xff] %v1204_v45  ;;  %v1207_v52 = vadd.f32 %v2252_v60, %v1206_v51 }
 0x49e   :  { %1285 = vst [vmem:[#allocation10 + $0x98] sm:$0xff] %v1215_v49 }
 0x49f   :  { %1283 = vst [vmem:[#allocation10 + $0x88] sm:$0xff] %v1207_v52 }
 0x4a9   :  { %v1741_v53 = vpop.f32.mrb[84].mxu0 }
 0x4aa   :  { %v1228_v54 = vadd.f32 %v1741_v53, %v2252_v60  ;;  %v1219_v55 = vpop.f32.mrb[85].mxu0 }
 0x4ab   :  { %v1220_v0 = vadd.f32 %v2252_v60, %v1219_v55  ;;  %v1742_v1 = vpop.f32.mrb[86].mxu0 }
 0x4ac   :  { %1288 = vst [vmem:[#allocation10 + $0xb0] sm:$0xff] %v1228_v54  ;;  %v1231_v9 = vadd.f32 %v1742_v1, %v2252_v60  ;;  %v1222_v10 = vpop.f32.mrb[87].mxu0 }
 0x4ad   :  { %1286 = vst [vmem:[#allocation10 + $0xa0] sm:$0xff] %v1220_v0  ;;  %v1223_v12 = vadd.f32 %v2252_v60, %v1222_v10 }
 0x4ae   :  { %1289 = vst [vmem:[#allocation10 + $0xb8] sm:$0xff] %v1231_v9 }
 0x4af   :  { %1287 = vst [vmem:[#allocation10 + $0xa8] sm:$0xff] %v1223_v12 }
 0x4b9   :  { %v1745_v13 = vpop.f32.mrb[88].mxu0 }
 0x4ba   :  { %v1244_v14 = vadd.f32 %v1745_v13, %v2252_v60  ;;  %v1235_v15 = vpop.f32.mrb[89].mxu0 }
 0x4bb   :  { %v1236_v16 = vadd.f32 %v2252_v60, %v1235_v15  ;;  %v1746_v21 = vpop.f32.mrb[90].mxu0 }
 0x4bc   :  { %1292 = vst [vmem:[#allocation10 + $0xd0] sm:$0xff] %v1244_v14  ;;  %v1247_v11 = vadd.f32 %v1746_v21, %v2252_v60  ;;  %v1238_v25 = vpop.f32.mrb[91].mxu0 }
 0x4bd   :  { %1290 = vst [vmem:[#allocation10 + $0xc0] sm:$0xff] %v1236_v16  ;;  %v1239_v3 = vadd.f32 %v2252_v60, %v1238_v25 }
 0x4be   :  { %1293 = vst [vmem:[#allocation10 + $0xd8] sm:$0xff] %v1247_v11 }
 0x4bf   :  { %1291 = vst [vmem:[#allocation10 + $0xc8] sm:$0xff] %v1239_v3 }
 0x4c9   :  { %v1749_v47 = vpop.f32.mrb[92].mxu0 }
 0x4ca   :  { %v1260_v2 = vadd.f32 %v1749_v47, %v2252_v60  ;;  %v1251_v50 = vpop.f32.mrb[93].mxu0 }
 0x4cb   :  { %v1252_v56 = vadd.f32 %v2252_v60, %v1251_v50  ;;  %v1750_v57 = vpop.f32.mrb[94].mxu0 }
 0x4cc   :  { %1296 = vst [vmem:[#allocation10 + $0xf0] sm:$0xff] %v1260_v2  ;;  %v1263_v58 = vadd.f32 %v1750_v57, %v2252_v60  ;;  %v1254_v59 = vpop.f32.mrb[95].mxu0 }
 0x4cd   :  { %1294 = vst [vmem:[#allocation10 + $0xe0] sm:$0xff] %v1252_v56  ;;  %v1255_v61 = vadd.f32 %v2252_v60, %v1254_v59 }
 0x4ce   :  { %1297 = vst [vmem:[#allocation10 + $0xf8] sm:$0xff] %v1263_v58 }
 0x4cf   :  { %1295 = vst [vmem:[#allocation10 + $0xe8] sm:$0xff] %v1255_v61 }
 0x4d0   :  { %1939 = shalt.err (!%p1936_p8)
}
 0x4d1   :  { %s1940_s29 = scalar_lea.hbm %s2307_s6, 4096 }
 0x4d2   :  { %p1941_p9 = scmp.ne.s32.totalorder %s2307_s6, %s1940_s29  ;;  %p1944_p10 = scmp.lt.u32.totalorder %s1940_s29, %s2307_s6 }
 0x4d4   :  { %p1946_p11 = pnand %p1944_p10, %p1941_p9 }
 0x4d6   :  { %1949 = shalt.err (!%p1946_p11)
}
 0x4d7   :  { %1309 = dma.vmem_to_hbm [thread:$0]  %s1304_s25, 4096, %s2307_s6, [#allocation4], %s1962_s1, %s1962_s1, %s1963_s21  }
 0x4d8   :  { %1956 = dma.done.wait [#allocation4], 4096  }
 0x4d9   :  { %1957 = vsyncadd [#allocation4], 4294963200 }
 0x4da   :  { %1313 = vsyncpa [#allocation3], 1 }
 0x4db   :  { %1314 = vsyncpa [#allocation6], 1 }
 0x4dc   :  { %1315 = vsyncpa [#allocation9], 1 }
 0x4dd   :  { %1316 = vsyncpa [#allocation4], 1 }

</bundles_post_ra>
